<compile_context>
chip_gen: v7x
topology: tpu7x:2x2x1
jax: 0.10.0
libtpu: 0.0.40
codegen_flags: <defaults>
</compile_context>

<pallas_src>
import jax
import jax.numpy as jnp
import numpy as np
from jax.experimental import pallas as pl
from jax.experimental.pallas import tpu as pltpu


# ---------------------------------------------------------------------------
# Kernel
# ---------------------------------------------------------------------------
def aft_full_kernel(x_ref, w_ref, b_ref, epos_ref, o_ref, rhs_ref, sq_ref):
    """One grid step: `block_b` batches of AFT-full attention.

    x_ref    : (block_b, n, d)     input block (compute dtype)
    w_ref    : (d, 3d)             fused [Wq|Wk|Wv]      (grid-invariant)
    b_ref    : (1, 3d)             fused [bq|bk|bv], f32 (grid-invariant)
    epos_ref : (n, n)              exp(pos - rowmax(pos)) (grid-invariant)
    o_ref    : (1, n, block_b*d)   lane-dense output slab (batch folded into lanes)
    rhs_ref  : (n, 2*block_b*d)    VMEM scratch: [ek*v (all b) | ek (all b)]
    sq_ref   : (n, block_b*d)      VMEM scratch: sigmoid(q), batch folded into lanes
    """
    block_b, n, d = x_ref.shape
    bd = block_b * d

    # ---- fused Q/K/V projection: one (B*n, d) @ (d, 3d) MXU matmul --------
    x2 = x_ref[...].reshape(block_b * n, d)
    qkv = jnp.dot(x2, w_ref[...], preferred_element_type=jnp.float32)
    qkv = qkv + b_ref[...]                                     # (B*n, 3d) f32

    # ---- fold the batch tile into the lane axis ----------------------------
    # Per batch b (static unroll, block_b is small) write
    #   rhs[:,      b*d:(b+1)*d] = exp(k_b - keymax) * v_b
    #   rhs[:, bd + b*d:(b+1)*d] = exp(k_b - keymax)
    #   sq [:,      b*d:(b+1)*d] = sigmoid(q_b)
    # so the (n,n) @ (n, 2*block_b*d) position matmul and the final output
    # store are lane-dense regardless of d.  The big f32 `qkv` intermediate
    # is dead after this loop (its live range does not overlap the matmul
    # result below).
    # TODO(synk): when d % 128 != 0, pad each projection to a multiple of 128
    # lanes in the wrapper so these slices / scratch stores are lane-aligned.
    for b in range(block_b):
        rows = qkv[b * n:(b + 1) * n, :]                       # (n, 3d) sublane slice
        k_b = rows[:, d:2 * d]
        v_b = rows[:, 2 * d:3 * d]
        # Stable exp: subtract the per-feature max over the key axis (the
        # subtracted factor cancels exactly between numerator / denominator).
        ek = jnp.exp(k_b - jnp.max(k_b, axis=0, keepdims=True))   # (n, d) f32
        rhs_ref[:, b * d:(b + 1) * d] = (ek * v_b).astype(rhs_ref.dtype)
        rhs_ref[:, bd + b * d:bd + (b + 1) * d] = ek.astype(rhs_ref.dtype)
        sq_ref[:, b * d:(b + 1) * d] = jax.nn.sigmoid(rows[:, 0:d])

    # ---- single lane-dense MXU matmul: (n, n) @ (n, 2*block_b*d) ----------
    nd_all = jnp.dot(epos_ref[...], rhs_ref[...],
                     preferred_element_type=jnp.float32)       # (n, 2*bd) f32
    num = nd_all[:, :bd]
    # Tiny epsilon: the two stabilising maxima (key-max, pos-row-max) are
    # subtracted independently, so den can underflow towards 0 in pathological
    # cases; the epsilon keeps the approximate reciprocal finite.
    den = nd_all[:, bd:] + 1e-30
    inv = pl.reciprocal(den, approx=True)                      # EUP
    inv = inv * (2.0 - den * inv)                              # one Newton step

    # Single lane-dense store (last dim = block_b*d) -> dense HBM writeback.
    o_ref[0] = (sq_ref[...] * num * inv).astype(o_ref.dtype)


# ---------------------------------------------------------------------------
# VMEM accounting & tiling heuristics
# ---------------------------------------------------------------------------
def _invariant_vmem_bytes(n, d, ci):
    # W_qkv + b_qkv + exp(pos), single-buffered.
    return 3 * d * d * ci + 3 * d * 4 + n * n * ci


def _step_vmem_bytes(block_b, n, d, ci, oi):
    x_blk = 2 * block_b * n * d * ci       # input block, double-buffered
    out_blk = 2 * n * block_b * d * oi     # output block, double-buffered
    qkv = block_b * n * 3 * d * 4          # f32 fused-projection result
    rhs = n * 2 * block_b * d * ci         # folded matmul RHS scratch
    sq = n * block_b * d * 4               # folded sigmoid(q) scratch
    nd = n * 2 * block_b * d * 4           # f32 matmul result
    tmp = 8 * n * d * 4                    # per-batch ek / ek*v / sigmoid temps
    return x_blk + out_blk + qkv + rhs + sq + nd + tmp


def _pick_block_b(bs, n, d, ci, oi, budget_bytes):
    """VMEM-aware batch tile: largest divisor of bs whose working set fits the
    budget, preferring >= 4 grid steps (2 per TensorCore on v7x), then >= 2."""
    inv = _invariant_vmem_bytes(n, d, ci)
    divisors = [c for c in range(1, bs + 1) if bs % c == 0]
    fits = [c for c in divisors
            if inv + _step_vmem_bytes(c, n, d, ci, oi) <= budget_bytes]
    if not fits:
        fits = [1]
    for min_steps in (4, 2, 1):
        ok = [c for c in fits if bs // c >= min_steps]
        if ok:
            return max(ok)
    return max(fits)


def _single_buffered_spec(block_shape, index_map):
    """BlockSpec for a grid-invariant input: 1-deep pipelining (no pointless
    double buffer).  Falls back to the default if this jax lacks Buffered."""
    try:
        return pl.BlockSpec(block_shape, index_map, pipeline_mode=pl.Buffered(1))
    except Exception:  # pragma: no cover - older jax
        return pl.BlockSpec(block_shape, index_map)


# ---------------------------------------------------------------------------
# Wrapper
# ---------------------------------------------------------------------------
def aft_full(x, wq, wk, wv, bq, bk, bv, pos, *,
             block_b=None, compute_dtype=jnp.bfloat16, out_dtype=None,
             vmem_budget_bytes=40 * 1024 * 1024):
    bs, n, d = x.shape
    out_dtype = x.dtype if out_dtype is None else out_dtype
    ci = jnp.dtype(compute_dtype).itemsize
    oi = jnp.dtype(out_dtype).itemsize

    if block_b is None:
        block_b = _pick_block_b(bs, n, d, ci, oi, vmem_budget_bytes)
    assert bs % block_b == 0
    num_blocks = bs // block_b
    bd = block_b * d

    # --- host-side (grid-invariant) preprocessing ---------------------------
    w_qkv = jnp.concatenate([wq, wk, wv], axis=1).astype(compute_dtype)   # (d, 3d)
    b_qkv = jnp.concatenate([bq, bk, bv], axis=1).astype(jnp.float32)     # (1, 3d)
    pos_f = pos.astype(jnp.float32)
    # exp(pos) hoisted out of the per-batch loop, row-max subtracted for
    # stability (cancels in num/den).
    epos = jnp.exp(pos_f - jnp.max(pos_f, axis=1, keepdims=True)).astype(compute_dtype)
    x_c = x.astype(compute_dtype)
    # TODO(synk): on v7x, epos could be fp8 (values in (0,1]) to halve its
    # VMEM/HBM footprint and double MXU throughput for the position matmul.

    est = _invariant_vmem_bytes(n, d, ci) + _step_vmem_bytes(block_b, n, d, ci, oi)
    vmem_limit = int(min(64 * 1024 * 1024, max(8 * 1024 * 1024, 1.4 * est)))

    cost = pl.CostEstimate(
        flops=int(bs * (6 * n * d * d + 4 * n * n * d)),
        transcendentals=int(3 * bs * n * d),
        bytes_accessed=int(bs * n * d * ci            # x
                           + bs * n * d * oi          # out
                           + 3 * d * d * ci           # W_qkv
                           + 3 * d * 4                # b_qkv
                           + n * n * ci),             # exp(pos)
    )

    out_folded = pl.pallas_call(
        aft_full_kernel,
        out_shape=jax.ShapeDtypeStruct((num_blocks, n, bd), out_dtype),
        grid_spec=pltpu.PrefetchScalarGridSpec(
            num_scalar_prefetch=0,
            grid=(num_blocks,),
            in_specs=[
                pl.BlockSpec((block_b, n, d), lambda i: (i, 0, 0)),     # x
                _single_buffered_spec((d, 3 * d), lambda i: (0, 0)),    # W_qkv
                _single_buffered_spec((1, 3 * d), lambda i: (0, 0)),    # b_qkv
                _single_buffered_spec((n, n), lambda i: (0, 0)),        # exp(pos)
            ],
            out_specs=pl.BlockSpec((1, n, bd), lambda i: (i, 0, 0)),
            scratch_shapes=[
                pltpu.VMEM((n, 2 * bd), compute_dtype),   # folded matmul RHS
                pltpu.VMEM((n, bd), jnp.float32),         # folded sigmoid(q)
            ],
        ),
        compiler_params=pltpu.CompilerParams(
            dimension_semantics=("parallel",),
            vmem_limit_bytes=vmem_limit,
        ),
        cost_estimate=cost,
    )(x_c, w_qkv, b_qkv, epos)
    # TODO(synk): for very large n (e.g. (n,n) epos no longer fitting 64 MiB
    # on v7x), add a second inner "arbitrary" grid axis tiling the query rows
    # of epos/output and stage the projected k,v once under pl.when(qtile==0).

    # Un-fold the lane-dense output slab back to (bs, n, d) — layout plumbing
    # done once in XLA, outside the kernel.
    out = out_folded.reshape(num_blocks, n, block_b, d)
    out = jnp.transpose(out, (0, 2, 1, 3)).reshape(bs, n, d)
    return out


# ---------------------------------------------------------------------------
# Pure-JAX reference (mirrors the PyTorch forward)
# ---------------------------------------------------------------------------
def aft_full_reference(x, wq, wk, wv, bq, bk, bv, pos):
    q = x @ wq + bq
    k = x @ wk + bk
    v = x @ wv + bv
    # k: (bs, n', d); pos viewed as (n, 1, n', 1)
    e = jnp.exp(k[None, :, :, :] + pos[:, None, :, None])      # (n, bs, n', d)
    num = jnp.sum(e * v[None, :, :, :], axis=2)                 # (n, bs, d)
    den = jnp.sum(e, axis=2)                                    # (n, bs, d)
    out = num / den
    out = jax.nn.sigmoid(q) * jnp.transpose(out, (1, 0, 2))     # (bs, n, d)
    return out


if __name__ == "__main__":
    bs, n, d_model = 4, 16, 32

    key = jax.random.PRNGKey(0)
    kx, kq, kk, kv = jax.random.split(key, 4)

    x = jax.random.normal(kx, (bs, n, d_model), dtype=jnp.float32)

    # nn.Linear init: weight ~ N(0, 0.001), bias = 0 (stored pre-transposed (d_in, d_out))
    wq = 0.001 * jax.random.normal(kq, (d_model, d_model), dtype=jnp.float32)
    wk = 0.001 * jax.random.normal(kk, (d_model, d_model), dtype=jnp.float32)
    wv = 0.001 * jax.random.normal(kv, (d_model, d_model), dtype=jnp.float32)
    bq = jnp.zeros((1, d_model), dtype=jnp.float32)
    bk = jnp.zeros((1, d_model), dtype=jnp.float32)
    bv = jnp.zeros((1, d_model), dtype=jnp.float32)

    # simple=False -> position_biases = ones((n, n))
    pos = jnp.ones((n, n), dtype=jnp.float32)

    ref = aft_full_reference(x, wq, wk, wv, bq, bk, bv, pos)

    # f32 compute path, auto block_b (4 grid steps): algorithmic correctness.
    out_f32 = aft_full(x, wq, wk, wv, bq, bk, bv, pos,
                       compute_dtype=jnp.float32)
    out_f32 = jax.block_until_ready(out_f32)
    np.testing.assert_allclose(np.asarray(out_f32), np.asarray(ref),
                               rtol=2e-3, atol=1e-6)

    # bf16 MXU path (default) with the whole batch folded into the lane axis
    # (block_b=4 -> one (n,n)@(n,256) matmul, lane-dense output slab).
    out_bf16 = aft_full(x, wq, wk, wv, bq, bk, bv, pos, block_b=4)
    out_bf16 = jax.block_until_ready(out_bf16)
    np.testing.assert_allclose(np.asarray(out_bf16), np.asarray(ref),
                               rtol=3e-2, atol=1e-4)

    print("KERNEL_OK")
</pallas_src>

<mosaic_0001>
module attributes {stable_mosaic.version = 11 : i64} {
  func.func @aft_full_kernel(%arg0: i32, %arg1: memref<1x16x32xf32, #tpu.memory_space<vmem>>, %arg2: memref<32x96xf32, #tpu.memory_space<vmem>>, %arg3: memref<1x96xf32, #tpu.memory_space<vmem>>, %arg4: memref<16x16xf32, #tpu.memory_space<vmem>>, %arg5: memref<1x16x32xf32, #tpu.memory_space<vmem>>, %arg6: memref<16x64xf32, #tpu.memory_space<vmem>>, %arg7: memref<16x32xf32, #tpu.memory_space<vmem>>) attributes {dimension_semantics = [#tpu.dimension_semantics<parallel>], iteration_bounds = array<i64: 4>, scalar_prefetch = 0 : i64, scratch_operands = 2 : i64, tpu.core_type = #tpu.core_type<tc>, window_params = [{transform_indices = @transform_0, window_bounds = array<i64: 1, 16, 32>}, {pipeline_mode = #tpu.pipeline_mode<synchronous>, transform_indices = @transform_1, window_bounds = array<i64: 32, 96>}, {pipeline_mode = #tpu.pipeline_mode<synchronous>, transform_indices = @transform_2, window_bounds = array<i64: 1, 96>}, {pipeline_mode = #tpu.pipeline_mode<synchronous>, transform_indices = @transform_3, window_bounds = array<i64: 16, 16>}, {transform_indices = @transform_4, window_bounds = array<i64: 1, 16, 32>}]} {
    %c0 = arith.constant 0 : index
    %c0_0 = arith.constant 0 : index
    %c0_1 = arith.constant 0 : index
    %0 = vector.load %arg1[%c0, %c0_0, %c0_1] : memref<1x16x32xf32, #tpu.memory_space<vmem>>, vector<1x16x32xf32>
    %1 = vector.shape_cast %0 : vector<1x16x32xf32> to vector<16x32xf32>
    %c0_2 = arith.constant 0 : index
    %c0_3 = arith.constant 0 : index
    %2 = vector.load %arg2[%c0_2, %c0_3] : memref<32x96xf32, #tpu.memory_space<vmem>>, vector<32x96xf32>
    %cst = arith.constant dense<0.000000e+00> : vector<16x96xf32>
    %3 = tpu.matmul %1, %2, %cst {dimension_numbers = #tpu.dot_dimension_numbers<[1], [0], [0], [1], [0, 0, 1, 1], [], []>} : vector<16x32xf32>, vector<32x96xf32>, vector<16x96xf32> -> vector<16x96xf32>
    %c0_4 = arith.constant 0 : index
    %c0_5 = arith.constant 0 : index
    %4 = vector.load %arg3[%c0_4, %c0_5] : memref<1x96xf32, #tpu.memory_space<vmem>>, vector<1x96xf32>
    %5 = vector.broadcast %4 : vector<1x96xf32> to vector<16x96xf32>
    %6 = arith.addf %3, %5 : vector<16x96xf32>
    %7 = vector.extract_strided_slice %6 {offsets = [0, 32], sizes = [16, 32], strides = [1, 1]} : vector<16x96xf32> to vector<16x32xf32>
    %8 = vector.extract_strided_slice %6 {offsets = [0, 64], sizes = [16, 32], strides = [1, 1]} : vector<16x96xf32> to vector<16x32xf32>
    %cst_6 = arith.constant dense<0xFF800000> : vector<32xf32>
    %9 = vector.multi_reduction <maximumf>, %7, %cst_6 [0] : vector<16x32xf32> to vector<32xf32>
    %10 = vector.shape_cast %9 : vector<32xf32> to vector<1x32xf32>
    %11 = vector.broadcast %10 : vector<1x32xf32> to vector<16x32xf32>
    %12 = arith.subf %7, %11 : vector<16x32xf32>
    %13 = math.exp %12 : vector<16x32xf32>
    %14 = arith.mulf %13, %8 : vector<16x32xf32>
    %c0_7 = arith.constant 0 : index
    %c0_8 = arith.constant 0 : index
    %15 = vector.load %arg6[%c0_7, %c0_8] : memref<16x64xf32, #tpu.memory_space<vmem>>, vector<16x32xf32>
    tpu.vector_store %arg6[%c0_7, %c0_8], %14 {strides = array<i32>} : memref<16x64xf32, #tpu.memory_space<vmem>>, vector<16x32xf32>,
    %c0_9 = arith.constant 0 : index
    %c32 = arith.constant 32 : index
    %16 = vector.load %arg6[%c0_9, %c32] : memref<16x64xf32, #tpu.memory_space<vmem>>, vector<16x32xf32>
    tpu.vector_store %arg6[%c0_9, %c32], %13 {strides = array<i32>} : memref<16x64xf32, #tpu.memory_space<vmem>>, vector<16x32xf32>,
    %17 = vector.extract_strided_slice %6 {offsets = [0, 0], sizes = [16, 32], strides = [1, 1]} : vector<16x96xf32> to vector<16x32xf32>
    %18 = arith.negf %17 : vector<16x32xf32>
    %19 = math.exp %18 : vector<16x32xf32>
    %cst_10 = arith.constant 1.000000e+00 : f32
    %20 = vector.broadcast %cst_10 : f32 to vector<16x32xf32>
    %21 = arith.addf %20, %19 : vector<16x32xf32>
    %22 = arith.divf %20, %21 : vector<16x32xf32>
    %c0_11 = arith.constant 0 : index
    %c0_12 = arith.constant 0 : index
    %23 = vector.load %arg7[%c0_11, %c0_12] : memref<16x32xf32, #tpu.memory_space<vmem>>, vector<16x32xf32>
    tpu.vector_store %arg7[%c0_11, %c0_12], %22 {strides = array<i32>} : memref<16x32xf32, #tpu.memory_space<vmem>>, vector<16x32xf32>,
    %c0_13 = arith.constant 0 : index
    %c0_14 = arith.constant 0 : index
    %24 = vector.load %arg4[%c0_13, %c0_14] : memref<16x16xf32, #tpu.memory_space<vmem>>, vector<16x16xf32>
    %c0_15 = arith.constant 0 : index
    %c0_16 = arith.constant 0 : index
    %25 = vector.load %arg6[%c0_15, %c0_16] : memref<16x64xf32, #tpu.memory_space<vmem>>, vector<16x64xf32>
    %cst_17 = arith.constant dense<0.000000e+00> : vector<16x64xf32>
    %26 = tpu.matmul %24, %25, %cst_17 {dimension_numbers = #tpu.dot_dimension_numbers<[1], [0], [0], [1], [0, 0, 1, 1], [], []>} : vector<16x16xf32>, vector<16x64xf32>, vector<16x64xf32> -> vector<16x64xf32>
    %27 = vector.extract_strided_slice %26 {offsets = [0, 0], sizes = [16, 32], strides = [1, 1]} : vector<16x64xf32> to vector<16x32xf32>
    %28 = vector.extract_strided_slice %26 {offsets = [0, 32], sizes = [16, 32], strides = [1, 1]} : vector<16x64xf32> to vector<16x32xf32>
    %cst_18 = arith.constant 1.000000e-30 : f32
    %29 = vector.broadcast %cst_18 : f32 to vector<16x32xf32>
    %30 = arith.addf %28, %29 : vector<16x32xf32>
    %31 = tpu.reciprocal %30 {approx = true} : vector<16x32xf32> -> vector<16x32xf32>
    %32 = arith.mulf %30, %31 : vector<16x32xf32>
    %cst_19 = arith.constant 2.000000e+00 : f32
    %33 = vector.broadcast %cst_19 : f32 to vector<16x32xf32>
    %34 = arith.subf %33, %32 : vector<16x32xf32>
    %35 = arith.mulf %31, %34 : vector<16x32xf32>
    %c0_20 = arith.constant 0 : index
    %c0_21 = arith.constant 0 : index
    %36 = vector.load %arg7[%c0_20, %c0_21] : memref<16x32xf32, #tpu.memory_space<vmem>>, vector<16x32xf32>
    %37 = arith.mulf %36, %27 : vector<16x32xf32>
    %38 = arith.mulf %37, %35 : vector<16x32xf32>
    %c0_22 = arith.constant 0 : index
    %c0_23 = arith.constant 0 : index
    %c0_24 = arith.constant 0 : index
    %39 = vector.load %arg5[%c0_22, %c0_23, %c0_24] : memref<1x16x32xf32, #tpu.memory_space<vmem>>, vector<1x16x32xf32>
    %40 = vector.shape_cast %39 : vector<1x16x32xf32> to vector<16x32xf32>
    %41 = vector.shape_cast %38 : vector<16x32xf32> to vector<1x16x32xf32>
    tpu.vector_store %arg5[%c0_22, %c0_23, %c0_24], %41 {strides = array<i32>} : memref<1x16x32xf32, #tpu.memory_space<vmem>>, vector<1x16x32xf32>,
    return
  }
  func.func @transform_0(%arg0: i32) -> (i32, i32, i32) {
    %c0_i32 = arith.constant 0 : i32
    %c0_i32_0 = arith.constant 0 : i32
    %c0_i32_1 = arith.constant 0 : i32
    return %arg0, %c0_i32, %c0_i32_0 : i32, i32, i32
  }
  func.func @transform_1(%arg0: i32) -> (i32, i32) {
    %c0_i32 = arith.constant 0 : i32
    %c0_i32_0 = arith.constant 0 : i32
    %c0_i32_1 = arith.constant 0 : i32
    return %c0_i32, %c0_i32_0 : i32, i32
  }
  func.func @transform_2(%arg0: i32) -> (i32, i32) {
    %c0_i32 = arith.constant 0 : i32
    %c0_i32_0 = arith.constant 0 : i32
    %c0_i32_1 = arith.constant 0 : i32
    return %c0_i32, %c0_i32_0 : i32, i32
  }
  func.func @transform_3(%arg0: i32) -> (i32, i32) {
    %c0_i32 = arith.constant 0 : i32
    %c0_i32_0 = arith.constant 0 : i32
    %c0_i32_1 = arith.constant 0 : i32
    return %c0_i32, %c0_i32_0 : i32, i32
  }
  func.func @transform_4(%arg0: i32) -> (i32, i32, i32) {
    %c0_i32 = arith.constant 0 : i32
    %c0_i32_0 = arith.constant 0 : i32
    %c0_i32_1 = arith.constant 0 : i32
    return %arg0, %c0_i32, %c0_i32_0 : i32, i32, i32
  }
}

</mosaic_0001>

<bundles_post_ra>
// kernel: tpu_custom_call.1
= control target key start
LH: loop header
LB: loop body
LE: loop exit
PB: predicated region body
PF: predicated region fallthrough
CT: control target
= control target key end

     0   :  { %9 = vsyncpa [#allocation5], 0  ;;  %s1216_s0 = inlined_call_operand.hbm [shape: f32[4,16,32], index: 0, kind: input, shape index: {}]   ;;  %s1217_s1 = inlined_call_operand.hbm [shape: f32[32,96], index: 1, kind: input, shape index: {}]   ;;  %s1218_s2 = inlined_call_operand.vmem [shape: f32[1,96], index: 2, kind: input, shape index: {}]   ;;  %s1219_s3 = inlined_call_operand.hbm [shape: f32[16,16], index: 3, kind: input, shape index: {}]   ;;  %s1220_s4 = inlined_call_operand.hbm [shape: f32[4,16,32], index: 4, kind: output, shape index: {}]  }
   0x1   :  { %11 = vsyncpa [#allocation5 + $0x1], 0 }
   0x2   :  { %12 = vsyncpa [#allocation8], 0 }
   0x3   :  { %13 = vsyncpa [#allocation6], 0 }
   0x4   :  { %15 = vsyncpa [#allocation6 + $0x1], 0  ;;  %s957_s15 = smov 0   ;;  %s959_s16 = smov 0  }
   0x5   :  { %s961_s17 = smov 0   ;;  %s963_s18 = smov 0  }
   0x6 LB: > { %s978_s19 = sadd.s32 4294967295, %s921_s18   ;;  %s610_s20 = sadd.s32 4294967294, %s921_s18   ;;  %s921_s18 = sphi %s963_s18, %s1239_s18   ;;  %s917_s17 = sphi %s961_s17, %s1238_s17   ;;  %s913_s16 = sphi %s959_s16, %s1237_s16   ;;  %s909_s15 = sphi %s957_s15, %s1236_s15  }
   0x7   : > { %p41_p0 = scmp.ne.s32.totalorder %s913_s16, %s909_s15  ;;  %p1221_p1 = scmp.eq.s32.totalorder %s978_s19, 0 }
   0x8   : > { %p134_p3 = scmp.eq.s32.totalorder %s610_s20, 3  ;;  %p611_p5 = scmp.ge.s32.totalorder %s921_s18, 1 }
   0x9   : > { %p987_p4 = por %p1221_p1, %p41_p0  ;;  %p141_p7 = scmp.lt.s32.totalorder %s921_s18, 5 }
   0xa   : > { %p992_p6 = por %p134_p3, %p41_p0  ;;  %s923_s24 = smov [#allocation7]  }
   0xb   : > { %s1224_s21 = scalar_select %p987_p4, 1, 0 }
   0xc   : > { %s1225_s22 = scalar_select %p992_p6, 1, 0 }
   0xd   : > { %p997_p8 = pnand %p611_p5, %p141_p7  ;;  %s153_s25 = sshll.u32 %s923_s24, 4  ;;  %s154_s25 = int_to_ptr.vmem [resolvable:$true] %s153_s25 }
   0xe   : > { %s924_s27 = smov [#allocation9]   ;;  %s765_s5 = scalar_lea.hbm %s1217_s1, 512 }
   0xf   : > { %s1226_s23 = scalar_select %p997_p8, 1, 0 }
  0x10   : > { %p689_p9 = pneg %p997_p8  ;;  %s169_s28 = sshll.u32 %s924_s27, 4  ;;  %s1009_s28 = int_to_ptr.vmem [resolvable:$true] %s169_s28 }
  0x11   : > { %p766_p11 = scmp.ne.s32.totalorder %s1217_s1, %s765_s5  ;;  %p772_p3 = scmp.lt.u32.totalorder %s765_s5, %s1217_s1 }
  0x12   : > { %p1005_p10 = pnand %p689_p9, %p1221_p1 }
  0x14   : > { %p767_p12 = pneg %p1005_p10 }
  0x16   : > { %p768_p13 = pnand %p767_p12, %p766_p11 }
  0x18   : > { %p769_p0 = pneg %p768_p13 }
  0x1a   : > { %p774_p5 = pnand %p772_p3, %p769_p0 }
  0x1c   : > { %777 = shalt.err (!%p774_p5)
}
  0x1d   : > { %s778_s10 = scalar_lea.vmem %s154_s25, 512  ;;  %p786_p2 = scmp.lt.s32.totalorder %s154_s25, %s154_s25 }
  0x1e   : > { %p779_p7 = scmp.ne.s32.totalorder %s154_s25, %s778_s10  ;;  %p787_p6 = scmp.lt.s32.totalorder %s778_s10, %s778_s10 }
  0x20   : > { %p781_p9 = pnand %p779_p7, %p767_p12  ;;  %p788_p4 = por %p787_p6, %p786_p2 }
  0x22   : > { %p782_p1 = pneg %p781_p9 }
  0x24   : > { %p789_p8 = pnand %p788_p4, %p782_p1 }
  0x26   : > { %792 = shalt.err (!%p789_p8)
}
  0x27   : > { %s925_s11 = smov 128   ;;  %s926_s12 = smov 8  }
  0x28   : > { %692 = dma.hbm_to_vmem [thread:$0]  (!%p1005_p10), %s1217_s1, 512, %s154_s25, [#allocation8], %s925_s11, %s925_s11, %s926_s12  }
  0x29   : > { %s793_s27 = scalar_lea.hbm %s1219_s3, 256 }
  0x2a   : > { %p794_p1 = scmp.ne.s32.totalorder %s1219_s3, %s793_s27  ;;  %p800_p6 = scmp.lt.u32.totalorder %s793_s27, %s1219_s3 }
  0x2c   : > { %p796_p2 = pnand %p794_p1, %p767_p12 }
  0x2e   : > { %p797_p4 = pneg %p796_p2 }
  0x30   : > { %p802_p8 = pnand %p800_p6, %p797_p4 }
  0x32   : > { %805 = shalt.err (!%p802_p8)
}
  0x33   : > { %s806_s25 = scalar_lea.vmem %s1009_s28, 256  ;;  %p814_p3 = scmp.lt.s32.totalorder %s1009_s28, %s1009_s28 }
  0x34   : > { %p807_p11 = scmp.ne.s32.totalorder %s1009_s28, %s806_s25  ;;  %p815_p5 = scmp.lt.s32.totalorder %s806_s25, %s806_s25 }
  0x36   : > { %p809_p13 = pnand %p807_p11, %p767_p12  ;;  %p816_p7 = por %p815_p5, %p814_p3 }
  0x38   : > { %p810_p0 = pneg %p809_p13 }
  0x3a   : > { %p817_p9 = pnand %p816_p7, %p810_p0 }
  0x3c   : > { %820 = shalt.err (!%p817_p9)
}
  0x3d   : > { %695 = dma.hbm_to_vmem [thread:$0]  (!%p1005_p10), %s1219_s3, 256, %s1009_s28, [#allocation8], %s925_s11, %s925_s11, %s926_s12  }
  0x3e   : > { %s1065_s26 = sadd.s32 1, %s921_s18   ;;  %s28_s9 = sadd.s32 1, %s917_s17 }
  0x3f   : > { %s25_s10 = ssub.s32 %s921_s18, %s1065_s26  ;;  %p35_p12 = scmp.ne.s32.totalorder %s917_s17, %s913_s16 }
  0x40   : > { %p26_p1 = scmp.eq.s32.totalorder %s25_s10, 0  ;;  %p36_p2 = scmp.eq.s32.totalorder %s921_s18, 0 }
  0x41   : > { %p1228_p4 = scmp.eq.s32.totalorder %s978_s19, 3  ;;  %p706_p8 = scmp.lt.s32.totalorder %s921_s18, 4 }
  0x42   : > { %s1081_s14 = scalar_select %p26_p1, %s917_s17, %s28_s9  }
  0x43   : > { %p1075_p6 = por %p1228_p4, %p35_p12  ;;  %p37_p11 = por %p36_p2, %p35_p12 }
  0x44   : > { %s183_s20 = sand.u32 1, %s917_s17   ;;  %s635_s28 = sshll.u32 %s921_s18, 8 }
  0x45   : > { %s615_s24 = sshll.u32 %s183_s20, 4  ;;  %s1088_s30 = scalar_lea.hbm %s1216_s0, %s635_s28 }
  0x46   : > { %s187_s5 = scalar_lea.vmem [#allocation4], %s615_s24  ;;  %p1092_p10 = pnand %p706_p8, %p37_p11 }
  0x47   : > { %s194_s6 = sshll.u32 %s187_s5, 4  ;;  %s1096_s7 = scalar_lea.sflag [#allocation5], %s183_s20  ;;  %s1090_s6 = int_to_ptr.vmem [resolvable:$true] %s194_s6 }
  0x48   : > { %s821_s8 = scalar_lea.hbm %s1088_s30, 256  ;;  %p823_p0 = pneg %p1092_p10 }
  0x49   : > { %p822_p13 = scmp.ne.s32.totalorder %s1088_s30, %s821_s8  ;;  %s826_s24 = scalar_lea.hbm %s1216_s0, 1024 }
  0x4a   : > { %p827_p7 = scmp.lt.u32.totalorder %s1088_s30, %s1216_s0  ;;  %p828_p9 = scmp.lt.u32.totalorder %s826_s24, %s821_s8 }
  0x4b   : > { %p824_p3 = pnand %p823_p0, %p822_p13  ;;  %p830_p1 = scmp.lt.u32.totalorder %s821_s8, %s1088_s30 }
  0x4c   : > { %p829_p12 = por %p828_p9, %p827_p7 }
  0x4d   : > { %p825_p5 = pneg %p824_p3 }
  0x4e   : > { %p831_p2 = por %p830_p1, %p829_p12 }
  0x50   : > { %p832_p4 = pnand %p831_p2, %p825_p5 }
  0x52   : > { %835 = shalt.err (!%p832_p4)
}
  0x53   : > { %s836_s20 = scalar_lea.vmem %s1090_s6, 256  ;;  %s927_s29 = smov [#allocation4]  }
  0x54   : > { %p837_p8 = scmp.ne.s32.totalorder %s1090_s6, %s836_s20  ;;  %s841_s5 = sshll.u32 %s927_s29, 4  ;;  %s842_s5 = int_to_ptr.vmem [resolvable:$false] %s841_s5 }
  0x55   : > { %s843_s9 = scalar_lea.vmem %s842_s5, 512  ;;  %p844_p3 = scmp.lt.s32.totalorder %s1090_s6, %s842_s5 }
  0x56   : > { %p839_p11 = pnand %p837_p8, %p823_p0  ;;  %p845_p7 = scmp.lt.s32.totalorder %s843_s9, %s836_s20 }
  0x58   : > { %p840_p13 = pneg %p839_p11  ;;  %p846_p9 = por %p845_p7, %p844_p3 }
  0x5a   : > { %p847_p12 = pnand %p846_p9, %p840_p13 }
  0x5c   : > { %850 = shalt.err (!%p847_p12)
}
  0x5d   : > { %699 = dma.hbm_to_vmem [thread:$0]  (!%p1092_p10), %s1088_s30, 256, %s1090_s6, %s1096_s7, %s925_s11, %s925_s11, %s926_s12  }
  0x5e   : > { %p1231_p0 = scmp.ne.s32.totalorder %s1226_s23, 0 }
  0x5f   : > { %s1130_s8 = sand.u32 (!%p1231_p0), 1, %s913_s16   ;;  %p1232_p5 = scmp.ne.s32.totalorder (!%p1231_p0), %s1224_s21, 0 }
  0x60   : > { %206 = sbr.rel (%p1231_p0) target bundleno = 948 (0x3b4), region = 36  ;;  %s619_s10 = sshll.u32 (!%p1231_p0), %s1130_s8, 4 }
  0x61   : > { %s209_s24 = scalar_lea.sflag (!%p1231_p0), [#allocation5], %s1130_s8  ;;  %s212_s25 = scalar_lea.vmem (!%p1231_p0), [#allocation4], %s619_s10 }
  0x67   : > { %896 = dma.done.wait (%p1232_p5), %s209_s24, 256  }
  0x68   : > { %898 = vsyncadd (%p1232_p5), %s209_s24, 4294967040  ;;  %p1233_p10 = scmp.eq.s32.totalorder %s978_s19, 0 }
  0x6a   : > { %900 = dma.done.wait (%p1233_p10), [#allocation8], 768   ;;  %p1234_p1 = pmov %p1233_p10 }
  0x6b   : > { %vm258_vm0 = vcmask 261120   ;;  %v247_v0 = vld [vmem:[#allocation7] sm:$0xff]  ;;  %v248_v1 = vld [vmem:[#allocation7 + $0x8] sm:$0xff]  ;;  %v249_v2 = vld [vmem:[#allocation7 + $0x10] sm:$0xff]  ;;  %vm340_vm1 = vcmask 523520   ;;  %s928_s11 = smov 96  }
  0x6c   : > { %902 = vsyncadd (%p1234_p1), [#allocation8], 4294966528  ;;  %v665_v3 = vpack.c.bf16 %v248_v1, %v247_v0  ;;  %v250_v4 = vld [vmem:[#allocation7 + $0x18] sm:$0xff]  ;;  %v245_v5 = vld [vmem:[%s212_s25] sm:$0xff]  ;;  %vm396_vm2 = vcmask 130048   ;;  %s244_s12 = scalar_lea.vmem [#allocation10], %s619_s10 }
  0x6d   : > { %v669_v6 = vpack.c.bf16 %v250_v4, %v249_v2  ;;  %655 = vmatprep.mubr.msk.f32.mxu0 %vm258_vm0, %v245_v5  ;;  %v246_v7 = vld [vmem:[%s212_s25 + $0x8] sm:$0xff]  ;;  %v623_v8 = vld [vmem:[%s1218_s2] ss:$0 sm:$0xff]  ;;  %s518_s30 = sshll.u32 %s244_s12, 4  ;;  %s636_s6 = sshll.u32 %s978_s19, 8  ;;  %s1166_s30 = int_to_ptr.vmem [resolvable:$true] %s518_s30 }
  0x6e   : > { %666 = vmatprep.subr.bf16.mxu0 %v665_v3  ;;  %v392_v40 = vld [vmem:[#allocation9] sm:$0xff]  ;;  %v393_v46 = vld [vmem:[#allocation9 + $0x8] sm:$0xff]  ;;  %s1171_s27 = scalar_lea.hbm %s1220_s4, %s636_s6  ;;  %s505_s19 = scalar_lea.sflag [#allocation6], %s1130_s8 }
  0x6f   : > { %668 = vmatpush3.bf16.msra.mxu0 %v665_v3  ;;  %662 = vmatprep.mubr.msk.f32.mxu1 %vm396_vm2, %v392_v40  ;;  %s851_s20 = scalar_lea.vmem %s1166_s30, 256  ;;  %s929_s29 = smov [#allocation10]  }
  0x70   : > { %670 = vmatprep.subr.bf16.mxu0 %v669_v6  ;;  %p852_p2 = scmp.ne.s32.totalorder %s1166_s30, %s851_s20  ;;  %s855_s5 = sshll.u32 %s929_s29, 4  ;;  %s856_s5 = int_to_ptr.vmem [resolvable:$false] %s855_s5 }
  0x71   : > { %s857_s9 = scalar_lea.vmem %s856_s5, 512  ;;  %p858_p11 = scmp.lt.s32.totalorder %s1166_s30, %s856_s5 }
  0x72   : > { %p853_p4 = pnand %p852_p2, %p1075_p6  ;;  %p859_p13 = scmp.lt.s32.totalorder %s857_s9, %s851_s20 }
  0x73   : > { %672 = vmatpush3.bf16.msra.mxu0 %v669_v6 }
  0x74   : > { %p854_p8 = pneg %p853_p4  ;;  %p860_p3 = por %p859_p13, %p858_p11 }
  0x76   : > { %656 = vmatmul.mubr.msk.f32.vlgmr.msra.gmra.mrb[0].mxu0 %vm258_vm0, %v246_v7  ;;  %p861_p7 = pnand %p860_p3, %p854_p8 }
 0x149   : > { %v657_v9 = vpop.f32.mrb[0].mxu0 }
 0x14a   : > { %v337_v10 = vadd.f32 %v657_v9, %v623_v8  ;;  %v331_v11 = vpop.f32.mrb[1].mxu0 }
 0x14b   : > { %v332_v12 = vadd.f32 %v623_v8, %v331_v11 }
 0x14c   : > { %v342_v13 = vsel %vm340_vm1, %v337_v10, -inf  ;;  %v627_v14 = vmul.f32 -1.442695, %v337_v10 }
 0x14d   : > { %v341_v15 = vsel %vm340_vm1, %v332_v12, -inf  ;;  %v626_v16 = vmul.f32 -1.442695, %v332_v12  ;;  %358 = vrot.lane.b32.xlu0 %v332_v12, %s928_s11 }
 0x14e   : > { %749 = vpow2.f32 %v627_v14  ;;  %v343_v17 = vmax.f32 %v341_v15, %v342_v13 }
 0x14f   : > { %751 = vpow2.f32 %v626_v16 }
 0x150   : > { %v344_v18 = vrot.slane %v343_v17, 4 }
 0x151   : > { %360 = vrot.lane.b32.xlu0 %v337_v10, %s928_s11 }
 0x152   : > { %v345_v19 = vmax.f32 %v343_v17, %v344_v18 }
 0x154   : > { %v346_v20 = vrot.slane %v345_v19, 2 }
 0x156   : > { %v347_v21 = vmax.f32 %v345_v19, %v346_v20 }
 0x158   : > { %v750_v22 = vpop.eup %749  ;;  %v348_v23 = vrot.slane %v347_v21, 1 }
 0x159   : > { %v752_v24 = vpop.eup %751  ;;  %v385_v25 = vadd.f32 1.0, %v750_v22 }
 0x15a   : > { %v349_v26 = vmax.f32 %v347_v21, %v348_v23  ;;  %v384_v27 = vadd.f32 1.0, %v752_v24 }
 0x15b   : > { %753 = vrcp.f32 %v385_v25 }
 0x15c   : > { %v350_v28 = vsub.f32 %v332_v12, %v349_v26  ;;  %755 = vrcp.f32 %v384_v27  ;;  %v351_v29 = vsub.f32 %v337_v10, %v349_v26 }
 0x15e   : > { %v352_v32 = vmul.f32 1.442695, %v350_v28  ;;  %v354_v33 = vmul.f32 1.442695, %v351_v29 }
 0x160   : > { %757 = vpow2.f32 %v352_v32 }
 0x161   : > { %759 = vpow2.f32 %v354_v33 }
 0x165   : > { %v754_v30 = vpop.eup %753 }
 0x166   : > { %v756_v31 = vpop.eup %755  ;;  %391 = vst.msk [vmem:[#allocation3 + $0x8] sm:$0xff] %vm258_vm0, %v754_v30 }
 0x167   : > { %390 = vst.msk [vmem:[#allocation3] sm:$0xff] %vm258_vm0, %v756_v31 }
 0x16a   : > { %v758_v34 = vpop.eup %757 }
 0x16b   : > { %v760_v37 = vpop.eup %759 }
 0x16d   : > { %v489_v59 = vld [vmem:[#allocation3 + $0x8] sm:$0xff] }
 0x16e   : > { %v488_v61 = vld [vmem:[#allocation3] sm:$0xff] }
 0x1bf   : > { %v359_v35 = vpop.permute.xlu0 %358 }
 0x1c0   : > { %v364_v36 = vmul.f32 %v758_v34, %v359_v35 }
 0x1c2   : > { %368 = vrot.lane.b32.xlu1 %v364_v36, %s928_s11 }
 0x1c3   : > { %v361_v38 = vpop.permute.xlu0 %360 }
 0x1c4   : > { %v365_v39 = vmul.f32 %v760_v37, %v361_v38 }
 0x1c6   : > { %370 = vrot.lane.b32.xlu1 %v365_v39, %s928_s11 }
 0x234   : > { %v369_v41 = vpop.permute.xlu1 %368 }
 0x235   : > { %374 = vst.msk [vmem:[#allocation2] sm:$0xff] %vm258_vm0, %v369_v41 }
 0x236   : > { %376 = vst.msk [vmem:[#allocation2] sm:$0xff] %vm340_vm1, %v758_v34 }
 0x238   : > { %v371_v42 = vpop.permute.xlu1 %370 }
 0x239   : > { %375 = vst.msk [vmem:[#allocation2 + $0x8] sm:$0xff] %vm258_vm0, %v371_v42 }
 0x23a   : > { %377 = vst.msk [vmem:[#allocation2 + $0x8] sm:$0xff] %vm340_vm1, %v760_v37 }
 0x23d   : > { %v394_v43 = vld [vmem:[#allocation2] sm:$0xff] }
 0x241   : > { %v395_v44 = vld [vmem:[#allocation2 + $0x8] sm:$0xff] }
 0x242   : > { %v673_v45 = vpack.c.bf16 %v395_v44, %v394_v43 }
 0x244   : > { %674 = vmatprep.subr.bf16.mxu1 %v673_v45 }
 0x245   : > { %676 = vmatpush3.bf16.msra.mxu1 %v673_v45 }
 0x248   : > { %663 = vmatmul.mubr.msk.f32.vlgmr.msra.gmra.mrb[0].mxu1 %vm396_vm2, %v393_v46 }
 0x31b   : > { %v664_v47 = vpop.f32.mrb[0].mxu1 }
 0x31c   : > { %v479_v48 = vadd.f32 1e-30, %v664_v47  ;;  %v469_v49 = vpop.f32.mrb[1].mxu1  ;;  %v491_v60 = vmul.f32 %v664_v47, %v489_v59 }
 0x31d   : > { %v478_v50 = vadd.f32 1e-30, %v469_v49  ;;  %v490_v62 = vmul.f32 %v488_v61, %v469_v49 }
 0x31e   : > { %761 = vrcp.f32 %v479_v48 }
 0x31f   : > { %763 = vrcp.f32 %v478_v50 }
 0x328   : > { %v762_v51 = vpop.eup %761 }
 0x329   : > { %v764_v52 = vpop.eup %763  ;;  %v483_v53 = vmul.f32 %v762_v51, %v479_v48 }
 0x32a   : > { %v482_v54 = vmul.f32 %v764_v52, %v478_v50 }
 0x32b   : > { %v485_v55 = vsub.f32 2.0, %v483_v53 }
 0x32c   : > { %v484_v56 = vsub.f32 2.0, %v482_v54 }
 0x32d   : > { %v487_v57 = vmul.f32 %v762_v51, %v485_v55 }
 0x32e   : > { %v486_v58 = vmul.f32 %v764_v52, %v484_v56 }
 0x32f   : > { %496 = vrot.lane.b32.xlu1 %v487_v57, %s928_s11 }
 0x330   : > { %494 = vrot.lane.b32.xlu0 %v486_v58, %s928_s11 }
 0x3a1   : > { %v497_v63 = vpop.permute.xlu1 %496 }
 0x3a2   : > { %v501_v0 = vmul.f32 %v497_v63, %v491_v60  ;;  %v495_v1 = vpop.permute.xlu0 %494 }
 0x3a3   : > { %v500_v2 = vmul.f32 %v495_v1, %v490_v62 }
 0x3a4   : > { %503 = vst.msk [vmem:[%s244_s12 + $0x8] sm:$0xff] %vm258_vm0, %v501_v0 }
 0x3a5   : > { %502 = vst.msk [vmem:[%s244_s12] sm:$0xff] %vm258_vm0, %v500_v2 }
 0x3a6   : > { %864 = shalt.err (!%p861_p7)
}
 0x3a7   : > { %s865_s10 = scalar_lea.hbm %s1171_s27, 256  ;;  %s869_s21 = scalar_lea.hbm %s1220_s4, 1024 }
 0x3a8   : > { %p866_p9 = scmp.ne.s32.totalorder %s1171_s27, %s865_s10  ;;  %p870_p5 = scmp.lt.u32.totalorder %s1171_s27, %s1220_s4 }
 0x3a9   : > { %p871_p10 = scmp.lt.u32.totalorder %s869_s21, %s865_s10  ;;  %p873_p2 = scmp.lt.u32.totalorder %s865_s10, %s1171_s27 }
 0x3aa   : > { %p867_p12 = pnand %p866_p9, %p1075_p6 }
 0x3ab   : > { %p872_p1 = por %p871_p10, %p870_p5 }
 0x3ac   : > { %p868_p0 = pneg %p867_p12 }
 0x3ad   : > { %p874_p4 = por %p873_p2, %p872_p1 }
 0x3af   : > { %p875_p8 = pnand %p874_p4, %p868_p0 }
 0x3b1   : > { %878 = shalt.err (!%p875_p8)
}
 0x3b2   : > { %s930_s12 = smov 128   ;;  %s931_s6 = smov 8  }
 0x3b3   : > { %687 = dma.vmem_to_hbm [thread:$0]  (%p1075_p6), %s1166_s30, 256, %s1171_s27, %s505_s19, %s930_s12, %s930_s12, %s931_s6  }
 0x3b4 PF: > { %p709_p11 = scmp.ge.s32.totalorder %s921_s18, 2  ;;  %s533_s7 = sand.u32 1, %s909_s15  }
 0x3b5   : > { %p1235_p13 = scmp.ne.s32.totalorder %s1225_s22, 0  ;;  %s534_s28 = scalar_lea.sflag [#allocation6], %s533_s7 }
 0x3b7   : > { %p701_p3 = pnand %p709_p11, %p1235_p13 }
 0x3b9   : > { %904 = dma.done.wait (!%p701_p3), %s534_s28, 256  }
 0x3ba   : > { %906 = vsyncadd (!%p701_p3), %s534_s28, 4294967040  ;;  %p18_p7 = scmp.ge.s32.totalorder %s1065_s26, 6   ;;  %s1236_s15 = smov %s913_s16 }
 0x3bb   : > { %s1237_s16 = smov %s917_s17  ;;  %s1238_s17 = smov %s1081_s14 }
 0x3bc   : > { %s1239_s18 = smov %s1065_s26  ;;  %20 = sbr.rel (!%p18_p7) target bundleno = 6 (0x6), region = 89 }
 0x3c3   :  { %539 = vsyncpa [#allocation5], 1 }
 0x3c4   :  { %541 = vsyncpa [#allocation5 + $0x1], 1 }
 0x3c5   :  { %542 = vsyncpa [#allocation8], 1 }
 0x3c6   :  { %543 = vsyncpa [#allocation6], 1 }
 0x3c7   :  { %545 = vsyncpa [#allocation6 + $0x1], 1 }

</bundles_post_ra>
